<compile_context>
chip_gen: v6e
topology: v6e:2x2x1
jax: 0.10.0
libtpu: 0.0.40
codegen_flags: <defaults>
</compile_context>

<pallas_src>
import jax
import jax.numpy as jnp
from jax import lax
from jax.experimental import pallas as pl
from jax.experimental.pallas import tpu as pltpu

_LANE = 128


def _make_dice_kernel(n_heads, block_rows, full_rows, rem, need_mask):
    """Build the fused dice-sums kernel for `n_heads` prediction heads.

    Refs: (p_0..p_{H-1}, t, out, acc_0..acc_{2H}) where the accumulator /
    output layout is [inter_0, sum_pred_0, inter_1, sum_pred_1, ..., sum_tgt].
    """

    def kernel(*refs):
        p_refs = refs[:n_heads]
        t_ref = refs[n_heads]
        out_ref = refs[n_heads + 1]
        accs = refs[n_heads + 2:]
        i = pl.program_id(0)

        @pl.when(i == 0)
        def _init():
            for a in accs:
                a[...] = jnp.zeros_like(a)

        t = t_ref[...].astype(jnp.float32)

        if need_mask:
            # Global element index = ((i*block_rows + row) * 128 + lane);
            # valid iff it addresses one of the original n elements.
            r_ids = lax.broadcasted_iota(jnp.int32, (block_rows, _LANE), 0)
            g_rows = i * block_rows + r_ids
            if rem == 0:
                mask = g_rows < full_rows
            else:
                l_ids = lax.broadcasted_iota(jnp.int32, (block_rows, _LANE), 1)
                mask = (g_rows < full_rows) | (
                    (g_rows == full_rows) & (l_ids < rem))
            t = jnp.where(mask, t, 0.0)

        # Tile-shaped partial sums: pure VPU adds in the steady state.
        accs[2 * n_heads][...] += t
        for h in range(n_heads):
            sp = jax.nn.sigmoid(p_refs[h][...].astype(jnp.float32))
            if need_mask:
                sp = jnp.where(mask, sp, 0.0)
            accs[2 * h][...] += sp * t
            accs[2 * h + 1][...] += sp

        # Single cross-lane reduction + SMEM store on the final step only.
        @pl.when(i == pl.num_programs(0) - 1)
        def _finalize():
            for k in range(2 * n_heads + 1):
                out_ref[k] = jnp.sum(accs[k][...])

    return kernel


def _dice_sums_fused(preds, target, *, tile_rows=1024):
    """Returns f32[2H+1] = [inter_0, sum_p_0, ..., inter_{H-1}, sum_p_{H-1}, sum_t]."""
    n_heads = len(preds)
    n = int(target.size)
    tile_rows = max(8, (int(tile_rows) // 8) * 8)  # sublane-aligned tile

    # Contiguous reshape is free; only pad (one copy) if n % 128 != 0.
    pad = (-n) % _LANE
    flat_p = [p.reshape(-1) for p in preds]
    flat_t = target.reshape(-1)
    if pad:
        flat_p = [jnp.pad(f, (0, pad)) for f in flat_p]
        flat_t = jnp.pad(flat_t, (0, pad))
    rows = (n + pad) // _LANE

    p2 = [f.reshape(rows, _LANE) for f in flat_p]
    t2 = flat_t.reshape(rows, _LANE)

    block_rows = rows if rows <= tile_rows else tile_rows
    num_blocks = pl.cdiv(rows, block_rows)
    covered = num_blocks * block_rows * _LANE
    need_mask = covered != n          # any OOB rows / padded lanes to mask out
    full_rows = n // _LANE
    rem = n % _LANE

    kernel = _make_dice_kernel(n_heads, block_rows, full_rows, rem, need_mask)

    block_spec = pl.BlockSpec((block_rows, _LANE), lambda i: (i, 0))
    in_specs = [block_spec] * (n_heads + 1)

    sums = pl.pallas_call(
        kernel,
        out_shape=jax.ShapeDtypeStruct((2 * n_heads + 1,), jnp.float32),
        grid_spec=pltpu.PrefetchScalarGridSpec(
            num_scalar_prefetch=0,
            grid=(num_blocks,),
            in_specs=in_specs,
            out_specs=pl.BlockSpec(memory_space=pltpu.SMEM),
            scratch_shapes=[
                pltpu.VMEM((block_rows, _LANE), jnp.float32)
                for _ in range(2 * n_heads + 1)
            ],
        ),
        compiler_params=pltpu.CompilerParams(
            dimension_semantics=("arbitrary",)),
    )(*p2, t2)
    return sums


def dice_loss(preds, target, *, smooth=1e-5, weights=None, tile_rows=1024):
    """Equivalent of DiceLoss.forward(preds, target). `preds` is a list/tuple."""
    preds = list(preds)
    if weights is None:
        weights = [1.0] + [0.4] * (len(preds) - 1)

    sums = _dice_sums_fused(preds, target, tile_rows=tile_rows)
    sum_t = sums[2 * len(preds)]

    total = jnp.float32(0.0)
    for h in range(len(preds)):
        inter = sums[2 * h]
        sum_p = sums[2 * h + 1]
        dice = (2.0 * inter + smooth) / (sum_p + sum_t + smooth)
        total = total + (1.0 - dice) * jnp.float32(weights[h])
    return total


def _dice_loss_ref(preds, target, smooth=1e-5, weights=None):
    """Pure-JAX reference mirroring the PyTorch module."""
    if weights is None:
        weights = [1.0] + [0.4] * (len(preds) - 1)
    total = 0.0
    for w, pred in zip(weights, preds):
        p = jax.nn.sigmoid(pred.astype(jnp.float32))
        t = target.astype(jnp.float32)
        inter = jnp.sum(p * t)
        union = jnp.sum(p) + jnp.sum(t)
        dice = (2.0 * inter + smooth) / (union + smooth)
        total = total + (1.0 - dice) * w
    return total


if __name__ == "__main__":
    key = jax.random.PRNGKey(0)
    k1, k2, k3, k4, k5, k6 = jax.random.split(key, 6)

    # Case 1: NCHW, two prediction heads (n divisible by 128, single block).
    shape = (2, 4, 16, 16)
    pred0 = jax.random.normal(k1, shape, dtype=jnp.float32)
    pred1 = jax.random.normal(k2, shape, dtype=jnp.float32)
    target = jax.random.bernoulli(k3, p=0.5, shape=shape).astype(jnp.float32)
    preds = [pred0, pred1]

    loss = jax.block_until_ready(dice_loss(preds, target))
    ref = _dice_loss_ref(preds, target)
    assert jnp.allclose(loss, ref, rtol=1e-5, atol=1e-5), (loss, ref)

    # Case 2: multi-block accumulation path (tile smaller than total rows).
    loss2 = jax.block_until_ready(dice_loss(preds, target, tile_rows=8))
    assert jnp.allclose(loss2, ref, rtol=1e-5, atol=1e-5), (loss2, ref)

    # Case 3: ragged element count (not a multiple of 128) -> in-kernel mask.
    shape3 = (2, 3, 15, 17)
    p3a = jax.random.normal(k4, shape3, dtype=jnp.float32)
    p3b = jax.random.normal(k5, shape3, dtype=jnp.float32)
    t3 = jax.random.bernoulli(k6, p=0.5, shape=shape3).astype(jnp.float32)
    loss3 = jax.block_until_ready(dice_loss([p3a, p3b], t3))
    ref3 = _dice_loss_ref([p3a, p3b], t3)
    assert jnp.allclose(loss3, ref3, rtol=1e-5, atol=1e-5), (loss3, ref3)

    print("KERNEL_OK")
</pallas_src>

<mosaic_0001>
module attributes {stable_mosaic.version = 11 : i64} {
  func.func @kernel(%arg0: i32, %arg1: memref<16x128xf32, #tpu.memory_space<vmem>>, %arg2: memref<16x128xf32, #tpu.memory_space<vmem>>, %arg3: memref<16x128xf32, #tpu.memory_space<vmem>>, %arg4: memref<5xf32, #tpu.memory_space<smem>>, %arg5: memref<16x128xf32, #tpu.memory_space<vmem>>, %arg6: memref<16x128xf32, #tpu.memory_space<vmem>>, %arg7: memref<16x128xf32, #tpu.memory_space<vmem>>, %arg8: memref<16x128xf32, #tpu.memory_space<vmem>>, %arg9: memref<16x128xf32, #tpu.memory_space<vmem>>) attributes {dimension_semantics = [#tpu.dimension_semantics<arbitrary>], iteration_bounds = array<i64: 1>, scalar_prefetch = 0 : i64, scratch_operands = 5 : i64, tpu.core_type = #tpu.core_type<tc>, window_params = [{transform_indices = @transform_0, window_bounds = array<i64: 16, 128>}, {transform_indices = @transform_1, window_bounds = array<i64: 16, 128>}, {transform_indices = @transform_2, window_bounds = array<i64: 16, 128>}, {transform_indices = @transform_3, window_bounds = array<i64: 5>}]} {
    %c0_i32 = arith.constant 0 : i32
    %0 = arith.cmpi eq, %arg0, %c0_i32 : i32
    %1 = arith.extui %0 : i1 to i32
    %c0_i32_0 = arith.constant 0 : i32
    %2 = arith.cmpi ne, %1, %c0_i32_0 : i32
    scf.if %2 {
      %cst_29 = arith.constant 0.000000e+00 : f32
      %36 = vector.broadcast %cst_29 : f32 to vector<16x128xf32>
      %c0_30 = arith.constant 0 : index
      %c0_31 = arith.constant 0 : index
      %37 = vector.load %arg5[%c0_30, %c0_31] : memref<16x128xf32, #tpu.memory_space<vmem>>, vector<16x128xf32>
      tpu.vector_store %arg5[%c0_30, %c0_31], %36 {strides = array<i32>} : memref<16x128xf32, #tpu.memory_space<vmem>>, vector<16x128xf32>,
      %cst_32 = arith.constant 0.000000e+00 : f32
      %38 = vector.broadcast %cst_32 : f32 to vector<16x128xf32>
      %c0_33 = arith.constant 0 : index
      %c0_34 = arith.constant 0 : index
      %39 = vector.load %arg6[%c0_33, %c0_34] : memref<16x128xf32, #tpu.memory_space<vmem>>, vector<16x128xf32>
      tpu.vector_store %arg6[%c0_33, %c0_34], %38 {strides = array<i32>} : memref<16x128xf32, #tpu.memory_space<vmem>>, vector<16x128xf32>,
      %cst_35 = arith.constant 0.000000e+00 : f32
      %40 = vector.broadcast %cst_35 : f32 to vector<16x128xf32>
      %c0_36 = arith.constant 0 : index
      %c0_37 = arith.constant 0 : index
      %41 = vector.load %arg7[%c0_36, %c0_37] : memref<16x128xf32, #tpu.memory_space<vmem>>, vector<16x128xf32>
      tpu.vector_store %arg7[%c0_36, %c0_37], %40 {strides = array<i32>} : memref<16x128xf32, #tpu.memory_space<vmem>>, vector<16x128xf32>,
      %cst_38 = arith.constant 0.000000e+00 : f32
      %42 = vector.broadcast %cst_38 : f32 to vector<16x128xf32>
      %c0_39 = arith.constant 0 : index
      %c0_40 = arith.constant 0 : index
      %43 = vector.load %arg8[%c0_39, %c0_40] : memref<16x128xf32, #tpu.memory_space<vmem>>, vector<16x128xf32>
      tpu.vector_store %arg8[%c0_39, %c0_40], %42 {strides = array<i32>} : memref<16x128xf32, #tpu.memory_space<vmem>>, vector<16x128xf32>,
      %cst_41 = arith.constant 0.000000e+00 : f32
      %44 = vector.broadcast %cst_41 : f32 to vector<16x128xf32>
      %c0_42 = arith.constant 0 : index
      %c0_43 = arith.constant 0 : index
      %45 = vector.load %arg9[%c0_42, %c0_43] : memref<16x128xf32, #tpu.memory_space<vmem>>, vector<16x128xf32>
      tpu.vector_store %arg9[%c0_42, %c0_43], %44 {strides = array<i32>} : memref<16x128xf32, #tpu.memory_space<vmem>>, vector<16x128xf32>,
    } else {
    }
    %c0 = arith.constant 0 : index
    %c0_1 = arith.constant 0 : index
    %3 = vector.load %arg3[%c0, %c0_1] : memref<16x128xf32, #tpu.memory_space<vmem>>, vector<16x128xf32>
    %c0_2 = arith.constant 0 : index
    %c0_3 = arith.constant 0 : index
    %4 = vector.load %arg9[%c0_2, %c0_3] : memref<16x128xf32, #tpu.memory_space<vmem>>, vector<16x128xf32>
    %5 = arith.addf %4, %3 : vector<16x128xf32>
    %c0_4 = arith.constant 0 : index
    %c0_5 = arith.constant 0 : index
    %6 = vector.load %arg9[%c0_4, %c0_5] : memref<16x128xf32, #tpu.memory_space<vmem>>, vector<16x128xf32>
    tpu.vector_store %arg9[%c0_4, %c0_5], %5 {strides = array<i32>} : memref<16x128xf32, #tpu.memory_space<vmem>>, vector<16x128xf32>,
    %c0_6 = arith.constant 0 : index
    %c0_7 = arith.constant 0 : index
    %7 = vector.load %arg1[%c0_6, %c0_7] : memref<16x128xf32, #tpu.memory_space<vmem>>, vector<16x128xf32>
    %8 = arith.negf %7 : vector<16x128xf32>
    %9 = math.exp %8 : vector<16x128xf32>
    %cst = arith.constant 1.000000e+00 : f32
    %10 = vector.broadcast %cst : f32 to vector<16x128xf32>
    %11 = arith.addf %10, %9 : vector<16x128xf32>
    %12 = arith.divf %10, %11 : vector<16x128xf32>
    %c0_8 = arith.constant 0 : index
    %c0_9 = arith.constant 0 : index
    %13 = vector.load %arg5[%c0_8, %c0_9] : memref<16x128xf32, #tpu.memory_space<vmem>>, vector<16x128xf32>
    %14 = arith.mulf %12, %3 : vector<16x128xf32>
    %15 = arith.addf %13, %14 : vector<16x128xf32>
    %c0_10 = arith.constant 0 : index
    %c0_11 = arith.constant 0 : index
    %16 = vector.load %arg5[%c0_10, %c0_11] : memref<16x128xf32, #tpu.memory_space<vmem>>, vector<16x128xf32>
    tpu.vector_store %arg5[%c0_10, %c0_11], %15 {strides = array<i32>} : memref<16x128xf32, #tpu.memory_space<vmem>>, vector<16x128xf32>,
    %c0_12 = arith.constant 0 : index
    %c0_13 = arith.constant 0 : index
    %17 = vector.load %arg6[%c0_12, %c0_13] : memref<16x128xf32, #tpu.memory_space<vmem>>, vector<16x128xf32>
    %18 = arith.addf %17, %12 : vector<16x128xf32>
    %c0_14 = arith.constant 0 : index
    %c0_15 = arith.constant 0 : index
    %19 = vector.load %arg6[%c0_14, %c0_15] : memref<16x128xf32, #tpu.memory_space<vmem>>, vector<16x128xf32>
    tpu.vector_store %arg6[%c0_14, %c0_15], %18 {strides = array<i32>} : memref<16x128xf32, #tpu.memory_space<vmem>>, vector<16x128xf32>,
    %c0_16 = arith.constant 0 : index
    %c0_17 = arith.constant 0 : index
    %20 = vector.load %arg2[%c0_16, %c0_17] : memref<16x128xf32, #tpu.memory_space<vmem>>, vector<16x128xf32>
    %21 = arith.negf %20 : vector<16x128xf32>
    %22 = math.exp %21 : vector<16x128xf32>
    %cst_18 = arith.constant 1.000000e+00 : f32
    %23 = vector.broadcast %cst_18 : f32 to vector<16x128xf32>
    %24 = arith.addf %23, %22 : vector<16x128xf32>
    %25 = arith.divf %23, %24 : vector<16x128xf32>
    %c0_19 = arith.constant 0 : index
    %c0_20 = arith.constant 0 : index
    %26 = vector.load %arg7[%c0_19, %c0_20] : memref<16x128xf32, #tpu.memory_space<vmem>>, vector<16x128xf32>
    %27 = arith.mulf %25, %3 : vector<16x128xf32>
    %28 = arith.addf %26, %27 : vector<16x128xf32>
    %c0_21 = arith.constant 0 : index
    %c0_22 = arith.constant 0 : index
    %29 = vector.load %arg7[%c0_21, %c0_22] : memref<16x128xf32, #tpu.memory_space<vmem>>, vector<16x128xf32>
    tpu.vector_store %arg7[%c0_21, %c0_22], %28 {strides = array<i32>} : memref<16x128xf32, #tpu.memory_space<vmem>>, vector<16x128xf32>,
    %c0_23 = arith.constant 0 : index
    %c0_24 = arith.constant 0 : index
    %30 = vector.load %arg8[%c0_23, %c0_24] : memref<16x128xf32, #tpu.memory_space<vmem>>, vector<16x128xf32>
    %31 = arith.addf %30, %25 : vector<16x128xf32>
    %c0_25 = arith.constant 0 : index
    %c0_26 = arith.constant 0 : index
    %32 = vector.load %arg8[%c0_25, %c0_26] : memref<16x128xf32, #tpu.memory_space<vmem>>, vector<16x128xf32>
    tpu.vector_store %arg8[%c0_25, %c0_26], %31 {strides = array<i32>} : memref<16x128xf32, #tpu.memory_space<vmem>>, vector<16x128xf32>,
    %c0_i32_27 = arith.constant 0 : i32
    %33 = arith.cmpi eq, %arg0, %c0_i32_27 : i32
    %34 = arith.extui %33 : i1 to i32
    %c0_i32_28 = arith.constant 0 : i32
    %35 = arith.cmpi ne, %34, %c0_i32_28 : i32
    scf.if %35 {
      %c0_29 = arith.constant 0 : index
      %c0_30 = arith.constant 0 : index
      %36 = vector.load %arg5[%c0_29, %c0_30] : memref<16x128xf32, #tpu.memory_space<vmem>>, vector<16x128xf32>
      %37 = vector.shape_cast %36 : vector<16x128xf32> to vector<1x16x128xf32>
      %cst_31 = arith.constant dense<0.000000e+00> : vector<1xf32>
      %38 = vector.multi_reduction <add>, %37, %cst_31 [1, 2] : vector<1x16x128xf32> to vector<1xf32>
      %39 = vector.shape_cast %38 : vector<1xf32> to vector<1x1x1xf32>
      %40 = vector.extract %39[0, 0, 0] : f32 from vector<1x1x1xf32>
      %c0_32 = arith.constant 0 : index
      %41 = memref.load %arg4[%c0_32] : memref<5xf32, #tpu.memory_space<smem>>
      memref.store %40, %arg4[%c0_32] : memref<5xf32, #tpu.memory_space<smem>>
      %c0_33 = arith.constant 0 : index
      %c0_34 = arith.constant 0 : index
      %42 = vector.load %arg6[%c0_33, %c0_34] : memref<16x128xf32, #tpu.memory_space<vmem>>, vector<16x128xf32>
      %43 = vector.shape_cast %42 : vector<16x128xf32> to vector<1x16x128xf32>
      %cst_35 = arith.constant dense<0.000000e+00> : vector<1xf32>
      %44 = vector.multi_reduction <add>, %43, %cst_35 [1, 2] : vector<1x16x128xf32> to vector<1xf32>
      %45 = vector.shape_cast %44 : vector<1xf32> to vector<1x1x1xf32>
      %46 = vector.extract %45[0, 0, 0] : f32 from vector<1x1x1xf32>
      %c1 = arith.constant 1 : index
      %47 = memref.load %arg4[%c1] : memref<5xf32, #tpu.memory_space<smem>>
      memref.store %46, %arg4[%c1] : memref<5xf32, #tpu.memory_space<smem>>
      %c0_36 = arith.constant 0 : index
      %c0_37 = arith.constant 0 : index
      %48 = vector.load %arg7[%c0_36, %c0_37] : memref<16x128xf32, #tpu.memory_space<vmem>>, vector<16x128xf32>
      %49 = vector.shape_cast %48 : vector<16x128xf32> to vector<1x16x128xf32>
      %cst_38 = arith.constant dense<0.000000e+00> : vector<1xf32>
      %50 = vector.multi_reduction <add>, %49, %cst_38 [1, 2] : vector<1x16x128xf32> to vector<1xf32>
      %51 = vector.shape_cast %50 : vector<1xf32> to vector<1x1x1xf32>
      %52 = vector.extract %51[0, 0, 0] : f32 from vector<1x1x1xf32>
      %c2 = arith.constant 2 : index
      %53 = memref.load %arg4[%c2] : memref<5xf32, #tpu.memory_space<smem>>
      memref.store %52, %arg4[%c2] : memref<5xf32, #tpu.memory_space<smem>>
      %c0_39 = arith.constant 0 : index
      %c0_40 = arith.constant 0 : index
      %54 = vector.load %arg8[%c0_39, %c0_40] : memref<16x128xf32, #tpu.memory_space<vmem>>, vector<16x128xf32>
      %55 = vector.shape_cast %54 : vector<16x128xf32> to vector<1x16x128xf32>
      %cst_41 = arith.constant dense<0.000000e+00> : vector<1xf32>
      %56 = vector.multi_reduction <add>, %55, %cst_41 [1, 2] : vector<1x16x128xf32> to vector<1xf32>
      %57 = vector.shape_cast %56 : vector<1xf32> to vector<1x1x1xf32>
      %58 = vector.extract %57[0, 0, 0] : f32 from vector<1x1x1xf32>
      %c3 = arith.constant 3 : index
      %59 = memref.load %arg4[%c3] : memref<5xf32, #tpu.memory_space<smem>>
      memref.store %58, %arg4[%c3] : memref<5xf32, #tpu.memory_space<smem>>
      %c0_42 = arith.constant 0 : index
      %c0_43 = arith.constant 0 : index
      %60 = vector.load %arg9[%c0_42, %c0_43] : memref<16x128xf32, #tpu.memory_space<vmem>>, vector<16x128xf32>
      %61 = vector.shape_cast %60 : vector<16x128xf32> to vector<1x16x128xf32>
      %cst_44 = arith.constant dense<0.000000e+00> : vector<1xf32>
      %62 = vector.multi_reduction <add>, %61, %cst_44 [1, 2] : vector<1x16x128xf32> to vector<1xf32>
      %63 = vector.shape_cast %62 : vector<1xf32> to vector<1x1x1xf32>
      %64 = vector.extract %63[0, 0, 0] : f32 from vector<1x1x1xf32>
      %c4 = arith.constant 4 : index
      %65 = memref.load %arg4[%c4] : memref<5xf32, #tpu.memory_space<smem>>
      memref.store %64, %arg4[%c4] : memref<5xf32, #tpu.memory_space<smem>>
    } else {
    }
    return
  }
  func.func @transform_0(%arg0: i32) -> (i32, i32) {
    %c0_i32 = arith.constant 0 : i32
    %c0_i32_0 = arith.constant 0 : i32
    return %arg0, %c0_i32 : i32, i32
  }
  func.func @transform_1(%arg0: i32) -> (i32, i32) {
    %c0_i32 = arith.constant 0 : i32
    %c0_i32_0 = arith.constant 0 : i32
    return %arg0, %c0_i32 : i32, i32
  }
  func.func @transform_2(%arg0: i32) -> (i32, i32) {
    %c0_i32 = arith.constant 0 : i32
    %c0_i32_0 = arith.constant 0 : i32
    return %arg0, %c0_i32 : i32, i32
  }
  func.func @transform_3(%arg0: i32) -> i32 {
    %c0_i32 = arith.constant 0 : i32
    %c0_i32_0 = arith.constant 0 : i32
    return %c0_i32 : i32
  }
}

</mosaic_0001>

<bundles_post_ra>
// kernel: tpu_custom_call.1
= control target key start
LH: loop header
LB: loop body
LE: loop exit
PB: predicated region body
PF: predicated region fallthrough
CT: control target
= control target key end

     0   :  { %8 = vsyncpa [#allocation8], 0  ;;  %s370_s0 = inlined_call_operand.hbm [shape: f32[16,128], index: 0, kind: input, shape index: {}]   ;;  %s371_s1 = inlined_call_operand.hbm [shape: f32[16,128], index: 1, kind: input, shape index: {}]   ;;  %s372_s2 = inlined_call_operand.hbm [shape: f32[16,128], index: 2, kind: input, shape index: {}]   ;;  %s373_s3 = inlined_call_operand.hbm [shape: f32[5], index: 3, kind: output, shape index: {}]  }
   0x1   :  { %9 = vsyncpa [#allocation11], 0 }
   0x2   :  { %10 = vsyncpa [#allocation9], 0  ;;  %s332_s12 = smov [#allocation10]   ;;  %s333_s14 = smov [#allocation7]  }
   0x3   :  { %s28_s13 = sshll.u32 %s332_s12, 4  ;;  %s16_s15 = sshll.u32 %s333_s14, 4  ;;  %s29_s13 = int_to_ptr.vmem [resolvable:$true] %s28_s13  ;;  %s17_s15 = int_to_ptr.vmem [resolvable:$true] %s16_s15 }
   0x4   :  { %s266_s16 = scalar_lea.vmem %s29_s13, 256  ;;  %p271_p1 = scmp.lt.s32.totalorder %s29_s13, %s29_s13 }
   0x5   :  { %p267_p0 = scmp.ne.s32.totalorder %s29_s13, %s266_s16  ;;  %p272_p2 = scmp.lt.s32.totalorder %s266_s16, %s266_s16 }
   0x7   :  { %p273_p3 = por %p272_p2, %p271_p1 }
   0x9   :  { %p274_p4 = pnand %p273_p3, %p267_p0 }
   0xb   :  { %277 = shalt.err (!%p274_p4)
}
   0xc   :  { %s334_s17 = smov 128   ;;  %s335_s18 = smov 8  }
   0xd   :  { %34 = dma.hbm_to_vmem [thread:$0]  %s371_s1, 256, %s29_s13, [#allocation11], %s334_s17, %s334_s17, %s335_s18  }
   0xe   :  { %s286_s21 = scalar_lea.vmem %s17_s15, 256  ;;  %p291_p6 = scmp.lt.s32.totalorder %s17_s15, %s17_s15 }
   0xf   :  { %p287_p5 = scmp.ne.s32.totalorder %s17_s15, %s286_s21  ;;  %p292_p7 = scmp.lt.s32.totalorder %s286_s21, %s286_s21 }
  0x11   :  { %p293_p8 = por %p292_p7, %p291_p6 }
  0x13   :  { %p294_p9 = pnand %p293_p8, %p287_p5 }
  0x15   :  { %297 = shalt.err (!%p294_p9)
}
  0x16   :  { %22 = dma.hbm_to_vmem [thread:$0]  %s370_s0, 256, %s17_s15, [#allocation8], %s334_s17, %s334_s17, %s335_s18  }
  0x17   :  { %s336_s24 = smov [#allocation12]  }
  0x18   :  { %s40_s25 = sshll.u32 %s336_s24, 4  ;;  %s41_s25 = int_to_ptr.vmem [resolvable:$true] %s40_s25 }
  0x19   :  { %s306_s26 = scalar_lea.vmem %s41_s25, 256  ;;  %p311_p11 = scmp.lt.s32.totalorder %s41_s25, %s41_s25 }
  0x1a   :  { %p307_p10 = scmp.ne.s32.totalorder %s41_s25, %s306_s26  ;;  %p312_p12 = scmp.lt.s32.totalorder %s306_s26, %s306_s26 }
  0x1c   :  { %p313_p13 = por %p312_p12, %p311_p11 }
  0x1e   :  { %p314_p0 = pnand %p313_p13, %p307_p10 }
  0x20   :  { %317 = shalt.err (!%p314_p0)
}
  0x21   :  { %46 = dma.hbm_to_vmem [thread:$0]  %s372_s2, 256, %s41_s25, [#allocation11], %s334_s17, %s334_s17, %s335_s18  }
  0x22   :  { %326 = dma.done.wait [#allocation8], 256  }
  0x23   :  { %327 = vsyncadd [#allocation8], 4294967040 }
  0x24   :  { %328 = dma.done.wait [#allocation11], 512  }
  0x25   :  { %329 = vsyncadd [#allocation11], 4294966784  ;;  %v78_v0 = vld [vmem:[#allocation7] sm:$0xff]  ;;  %v79_v1 = vld [vmem:[#allocation7 + $0x8] sm:$0xff]  ;;  %s337_s4 = smov [#allocation13]  }
  0x26   :  { %v222_v2 = vmul.f32 -1.442695, %v78_v0  ;;  %v223_v3 = vmul.f32 -1.442695, %v79_v1  ;;  %v106_v4 = vld [vmem:[#allocation10] sm:$0xff]  ;;  %v107_v5 = vld [vmem:[#allocation10 + $0x8] sm:$0xff] }
  0x27   :  { %v224_v6 = vmul.f32 -1.442695, %v106_v4  ;;  %v225_v7 = vmul.f32 -1.442695, %v107_v5  ;;  %v70_v17 = vld [vmem:[#allocation12] sm:$0xff]  ;;  %v71_v19 = vld [vmem:[#allocation12 + $0x8] sm:$0xff] }
  0x28   :  { %242 = vpow2.f32 %v222_v2  ;;  %v195_v30 = vadd.f32 %v71_v19, %v70_v17 }
  0x29   :  { %244 = vpow2.f32 %v223_v3 }
  0x2a   :  { %246 = vpow2.f32 %v224_v6 }
  0x2b   :  { %248 = vpow2.f32 %v225_v7 }
  0x35   :  { %v243_v8 = vpop.eup %242 }
  0x36   :  { %v245_v9 = vpop.eup %244  ;;  %v86_v10 = vadd.f32 1.0, %v243_v8 }
  0x37   :  { %v247_v11 = vpop.eup %246  ;;  %v87_v12 = vadd.f32 1.0, %v245_v9 }
  0x38   :  { %v249_v13 = vpop.eup %248  ;;  %250 = vrcp.f32 %v86_v10  ;;  %v114_v14 = vadd.f32 1.0, %v247_v11 }
  0x39   :  { %252 = vrcp.f32 %v87_v12  ;;  %v115_v15 = vadd.f32 1.0, %v249_v13 }
  0x3a   :  { %254 = vrcp.f32 %v114_v14 }
  0x3b   :  { %256 = vrcp.f32 %v115_v15 }
  0x45   :  { %v251_v16 = vpop.eup %250 }
  0x46   :  { %v253_v18 = vpop.eup %252  ;;  %v94_v20 = vmul.f32 %v251_v16, %v70_v17 }
  0x47   :  { %v255_v21 = vpop.eup %254  ;;  %v153_v22 = vadd.f32 %v253_v18, %v251_v16  ;;  %v95_v23 = vmul.f32 %v253_v18, %v71_v19 }
  0x48   :  { %v257_v24 = vpop.eup %256  ;;  %v122_v25 = vmul.f32 %v255_v21, %v70_v17 }
  0x49   :  { %154 = vadd.xlane.f32.xlu0 %v153_v22  ;;  %v123_v26 = vmul.f32 %v257_v24, %v71_v19  ;;  %v139_v27 = vadd.f32 %v95_v23, %v94_v20  ;;  %v181_v29 = vadd.f32 %v257_v24, %v255_v21 }
  0x4b   :  { %v167_v28 = vadd.f32 %v123_v26, %v122_v25 }
  0x4d   :  { %168 = vadd.xlane.f32.xlu1 %v167_v28  ;;  %140 = vadd.xlane.f32.xlu0 %v139_v27 }
  0x51   :  { %182 = vadd.xlane.f32.xlu1 %v181_v29  ;;  %196 = vadd.xlane.f32.xlu0 %v195_v30 }
  0xd2   :  { %v155_v31 = vpop.xlane.xlu0 %154 }
  0xd3   :  { %v156_v32 = vrot.slane %v155_v31, 4 }
  0xd5   :  { %v157_v33 = vadd.f32 %v156_v32, %v155_v31 }
  0xd6   :  { %v169_v34 = vpop.xlane.xlu1 %168  ;;  %v141_v35 = vpop.xlane.xlu0 %140 }
  0xd7   :  { %v158_v36 = vrot.slane %v157_v33, 2  ;;  %v170_v37 = vrot.slane %v169_v34, 4  ;;  %v142_v38 = vrot.slane %v141_v35, 4 }
  0xd9   :  { %v171_v39 = vadd.f32 %v170_v37, %v169_v34  ;;  %v143_v40 = vadd.f32 %v142_v38, %v141_v35  ;;  %v159_v43 = vadd.f32 %v158_v36, %v157_v33 }
  0xda   :  { %v183_v41 = vpop.xlane.xlu1 %182  ;;  %v197_v42 = vpop.xlane.xlu0 %196 }
  0xdb   :  { %v172_v44 = vrot.slane %v171_v39, 2  ;;  %v144_v45 = vrot.slane %v143_v40, 2  ;;  %v184_v46 = vrot.slane %v183_v41, 4  ;;  %v198_v47 = vrot.slane %v197_v42, 4 }
  0xdc   :  { %v160_v52 = vrot.slane %v159_v43, 1 }
  0xdd   :  { %v185_v48 = vadd.f32 %v184_v46, %v183_v41  ;;  %v199_v49 = vadd.f32 %v198_v47, %v197_v42  ;;  %v145_v50 = vadd.f32 %v144_v45, %v143_v40  ;;  %v173_v51 = vadd.f32 %v172_v44, %v171_v39 }
  0xde   :  { %v161_v60 = vadd.f32 %v160_v52, %v159_v43 }
  0xdf   :  { %v186_v53 = vrot.slane %v185_v48, 2  ;;  %v200_v54 = vrot.slane %v199_v49, 2  ;;  %v146_v55 = vrot.slane %v145_v50, 1  ;;  %v174_v56 = vrot.slane %v173_v51, 1 }
  0xe1   :  { %v187_v57 = vadd.f32 %v186_v53, %v185_v48  ;;  %v201_v58 = vadd.f32 %v200_v54, %v199_v49  ;;  %v147_v59 = vadd.f32 %v146_v55, %v145_v50  ;;  %v175_v61 = vadd.f32 %v174_v56, %v173_v51 }
  0xe3   :  { %226 = vpush %v147_v59  ;;  %v188_v62 = vrot.slane %v187_v57, 1  ;;  %v202_v63 = vrot.slane %v201_v58, 1 }
  0xe4   :  { %228 = vpush %v161_v60 }
  0xe5   :  { %230 = vpush %v175_v61  ;;  %v189_v0 = vadd.f32 %v188_v62, %v187_v57  ;;  %v203_v1 = vadd.f32 %v202_v63, %v201_v58 }
  0xe7   :  { %232 = vpush %v189_v0 }
  0xe8   :  { %234 = vpush %v203_v1 }
 0x114   :  { %s227_s0 = spop %226 }
 0x115   :  { %150 = sst [smem:[#allocation13]] %s227_s0  ;;  %s229_s2 = spop %228 }
 0x116   :  { %164 = sst [smem:[#allocation13 + $0x1]] %s229_s2  ;;  %s231_s28 = spop %230 }
 0x117   :  { %178 = sst [smem:[#allocation13 + $0x2]] %s231_s28 }
 0x118   :  { %s233_s29 = spop %232 }
 0x119   :  { %192 = sst [smem:[#allocation13 + $0x3]] %s233_s29  ;;  %s235_s30 = spop %234 }
 0x11a   :  { %206 = sst [smem:[#allocation13 + $0x4]] %s235_s30 }
 0x11b   :  { %214 = dma.smem_to_hbm %s337_s4, 16, %s373_s3, [#allocation9]  }
 0x11c   :  { %330 = dma.done.wait [#allocation9], 16  }
 0x11d   :  { %331 = vsyncadd [#allocation9], 4294967280 }
 0x11e   :  { %218 = sfence }
 0x11f   :  { %219 = vsyncpa [#allocation8], 1 }
 0x120   :  { %220 = vsyncpa [#allocation11], 1 }
 0x121   :  { %221 = vsyncpa [#allocation9], 1 }

</bundles_post_ra>
